<compile_context>
chip_gen: v7x
topology: tpu7x:2x2x1
jax: 0.10.0
libtpu: 0.0.40
codegen_flags: <defaults>
</compile_context>

<pallas_src>
from functools import partial

import jax
import jax.numpy as jnp
import numpy as np
from jax.experimental import pallas as pl
from jax.experimental.pallas import tpu as pltpu

EPS = 1e-5


def _round_up(n, m):
    return ((n + m - 1) // m) * m


def _vmem_budget_bytes():
    # ~3/4 of per-core VMEM: ~48 MiB on v7x (64 MiB), ~96 MiB on v5e/v6e (128 MiB).
    default_cap = 64 * 1024 * 1024
    try:
        cap = int(getattr(pltpu.get_tpu_info(), "vmem_capacity_bytes", default_cap))
    except Exception:
        cap = default_cap
    return (cap * 3) // 4


def adain_kernel(x_ref, sb_ref, o_ref, *, inv_l):
    # x_ref  : (TR, L)  rows = flattened (batch, channel), lanes = full length L
    # sb_ref : (TR, 2)  column 0 = per-row scale, column 1 = per-row bias
    x = x_ref[...]
    xf = x.astype(jnp.float32)                        # stats always in f32

    # Single-pass row statistics (divide by the true L via inv_l).
    s = jnp.sum(xf, axis=-1, keepdims=True)           # (TR, 1)
    s2 = jnp.sum(xf * xf, axis=-1, keepdims=True)     # (TR, 1)
    mean = s * inv_l
    var = jnp.maximum(s2 * inv_l - mean * mean, 0.0)  # clamp cancellation
    rstd = jax.lax.rsqrt(var + EPS)                   # EUP

    # Fused normalize + modulate:  out = x * a + b
    sb = sb_ref[...].astype(jnp.float32)
    a = sb[:, 0:1] * rstd                             # (TR, 1)
    b = sb[:, 1:2] - mean * a                         # (TR, 1)

    if o_ref.dtype == jnp.float32:
        o_ref[...] = xf * a + b
    else:
        # bf16 path: stats stay f32; the big elementwise FMA runs in the native
        # dtype (helps vreg/VMEM pressure on v6e/v7x; on v5e it executes at
        # 32-bit width anyway, which is fine).
        o_ref[...] = (x * a.astype(x.dtype) + b.astype(x.dtype)).astype(o_ref.dtype)


def adain_pallas(x, w, lin_weight, lin_bias, *, row_block_cap=None):
    """x: (B, C, L)  w: (B, F)  lin_weight: (2C, F)  lin_bias: (2C,)"""
    B, C, L = x.shape
    dtype = x.dtype
    R = B * C

    # --- Hoisted feature Linear (tiny, stays in XLA): (B,F)@(F,2C)+b ---
    lin = (w.astype(jnp.float32) @ lin_weight.T.astype(jnp.float32)
           + lin_bias.astype(jnp.float32))                                # (B, 2C)
    sb = jnp.stack([lin[:, :C].reshape(R), lin[:, C:].reshape(R)], axis=-1)  # (R, 2)

    xr = x.reshape(R, L)   # contiguous merge: no copy, no padding

    # --- Row-block sizing (generation-aware) ---
    itemsize = jnp.dtype(dtype).itemsize
    sub = max(8, 32 // itemsize)           # sublane granularity: 8 f32, 16 bf16
    budget = _vmem_budget_bytes()
    # Per block row: 2x input + 2x output buffers (native dtype) plus ~2 full
    # width f32 temporaries for the statistics path.
    bytes_per_row = L * (4 * itemsize + 8)
    tr_vmem = max(sub, (budget // bytes_per_row) // sub * sub)
    # TODO(synk): for extreme L where even `sub` rows exceed the VMEM budget, add
    # an L-blocked two-pass variant (accumulate s/s2 over an "arbitrary" L axis).

    Rs = _round_up(R, sub)
    if Rs >= 4 * sub:
        # Keep >= ~4 row blocks: v7x megacore needs >=2 steps per TensorCore and
        # the pipeline needs >=2 steps to overlap DMA with compute.
        tr_parallel = max(sub, _round_up(-(-Rs // 4), sub))
        TR = min(tr_vmem, tr_parallel)
    else:
        TR = min(tr_vmem, Rs)
    if row_block_cap is not None:
        TR = min(TR, max(sub, (row_block_cap // sub) * sub))
    if TR >= R:
        TR = R             # one full block (also covers R not divisible by `sub`)
    n_blocks = pl.cdiv(R, TR)   # ragged last block handled by Pallas

    out = pl.pallas_call(
        partial(adain_kernel, inv_l=1.0 / L),
        out_shape=jax.ShapeDtypeStruct((R, L), dtype),
        grid_spec=pltpu.PrefetchScalarGridSpec(
            num_scalar_prefetch=0,
            grid=(n_blocks,),
            in_specs=[
                pl.BlockSpec((TR, L), lambda r: (r, 0)),   # activation rows
                pl.BlockSpec((TR, 2), lambda r: (r, 0)),   # per-row (scale, bias)
            ],
            out_specs=pl.BlockSpec((TR, L), lambda r: (r, 0)),
        ),
        compiler_params=pltpu.CompilerParams(
            dimension_semantics=("parallel",),   # megacore sharding on v7x
            vmem_limit_bytes=budget,
        ),
    )(xr, sb)

    return out.reshape(B, C, L)


def adain_reference(x, w, lin_weight, lin_bias):
    xf = x.astype(jnp.float32)
    mean = jnp.mean(xf, axis=-1, keepdims=True)
    var = jnp.mean(jnp.square(xf - mean), axis=-1, keepdims=True)
    x_hat = (xf - mean) / jnp.sqrt(var + EPS)
    lin = (w.astype(jnp.float32) @ lin_weight.T.astype(jnp.float32)
           + lin_bias.astype(jnp.float32))                  # (B, 2C)
    C = x.shape[1]
    scale = lin[:, :C][:, :, None]
    bias = lin[:, C:][:, :, None]
    return scale * x_hat + bias


def _run_case(key, B, C, L, F, dtype=jnp.float32, rtol=1e-3, atol=1e-3,
              row_block_cap=None):
    kx, kw, kwt, kb = jax.random.split(key, 4)
    x = jax.random.normal(kx, (B, C, L), dtype=jnp.float32).astype(dtype)
    w = jax.random.normal(kw, (B, F), dtype=jnp.float32).astype(dtype)
    bound = 1.0 / np.sqrt(F)
    lin_weight = jax.random.uniform(kwt, (2 * C, F), jnp.float32, -bound, bound).astype(dtype)
    lin_bias = jax.random.uniform(kb, (2 * C,), jnp.float32, -bound, bound).astype(dtype)

    out = jax.block_until_ready(
        adain_pallas(x, w, lin_weight, lin_bias, row_block_cap=row_block_cap))
    ref = adain_reference(x, w, lin_weight, lin_bias)
    np.testing.assert_allclose(np.asarray(out, dtype=np.float32),
                               np.asarray(ref, dtype=np.float32),
                               rtol=rtol, atol=atol)


if __name__ == "__main__":
    key = jax.random.PRNGKey(0)
    k1, k2, k3, k4 = jax.random.split(key, 4)

    # Shape matching the module: batch=2, in_channels=4, length=16, feat=8.
    _run_case(k1, B=2, C=4, L=16, F=8)
    # R=18 (not a multiple of 8), L=200: single full-block path, no padding.
    _run_case(k2, B=3, C=6, L=200, F=5)
    # Force a multi-block grid with a ragged last row block (R=18, TR=8 -> 3 steps).
    _run_case(k3, B=3, C=6, L=200, F=5, row_block_cap=8)
    # bf16 path (stats in f32, FMA in bf16), multi-step parallel grid.
    _run_case(k4, B=8, C=16, L=128, F=8, dtype=jnp.bfloat16, rtol=3e-2, atol=3e-2)

    print("KERNEL_OK")
</pallas_src>

<mosaic_0001>
module attributes {stable_mosaic.version = 11 : i64} {
  func.func @adain_kernel(%arg0: i32, %arg1: memref<8x16xf32, #tpu.memory_space<vmem>>, %arg2: memref<8x2xf32, #tpu.memory_space<vmem>>, %arg3: memref<8x16xf32, #tpu.memory_space<vmem>>) attributes {dimension_semantics = [#tpu.dimension_semantics<parallel>], iteration_bounds = array<i64: 1>, scalar_prefetch = 0 : i64, scratch_operands = 0 : i64, tpu.core_type = #tpu.core_type<tc>, window_params = [{transform_indices = @transform_0, window_bounds = array<i64: 8, 16>}, {transform_indices = @transform_1, window_bounds = array<i64: 8, 2>}, {transform_indices = @transform_2, window_bounds = array<i64: 8, 16>}]} {
    %c0 = arith.constant 0 : index
    %c0_0 = arith.constant 0 : index
    %0 = vector.load %arg1[%c0, %c0_0] : memref<8x16xf32, #tpu.memory_space<vmem>>, vector<8x16xf32>
    %cst = arith.constant dense<0.000000e+00> : vector<8xf32>
    %1 = vector.multi_reduction <add>, %0, %cst [1] : vector<8x16xf32> to vector<8xf32>
    %2 = vector.shape_cast %1 : vector<8xf32> to vector<8x1xf32>
    %3 = arith.mulf %0, %0 : vector<8x16xf32>
    %cst_1 = arith.constant dense<0.000000e+00> : vector<8xf32>
    %4 = vector.multi_reduction <add>, %3, %cst_1 [1] : vector<8x16xf32> to vector<8xf32>
    %5 = vector.shape_cast %4 : vector<8xf32> to vector<8x1xf32>
    %cst_2 = arith.constant 6.250000e-02 : f32
    %6 = vector.broadcast %cst_2 : f32 to vector<8x1xf32>
    %7 = arith.mulf %2, %6 : vector<8x1xf32>
    %cst_3 = arith.constant 6.250000e-02 : f32
    %8 = vector.broadcast %cst_3 : f32 to vector<8x1xf32>
    %9 = arith.mulf %5, %8 : vector<8x1xf32>
    %10 = arith.mulf %7, %7 : vector<8x1xf32>
    %11 = arith.subf %9, %10 : vector<8x1xf32>
    %cst_4 = arith.constant 0.000000e+00 : f32
    %12 = vector.broadcast %cst_4 : f32 to vector<8x1xf32>
    %13 = arith.maximumf %11, %12 : vector<8x1xf32>
    %cst_5 = arith.constant 9.99999974E-6 : f32
    %14 = vector.broadcast %cst_5 : f32 to vector<8x1xf32>
    %15 = arith.addf %13, %14 : vector<8x1xf32>
    %16 = math.rsqrt %15 : vector<8x1xf32>
    %c0_6 = arith.constant 0 : index
    %c0_7 = arith.constant 0 : index
    %17 = vector.load %arg2[%c0_6, %c0_7] : memref<8x2xf32, #tpu.memory_space<vmem>>, vector<8x2xf32>
    %18 = vector.extract_strided_slice %17 {offsets = [0, 0], sizes = [8, 1], strides = [1, 1]} : vector<8x2xf32> to vector<8x1xf32>
    %19 = arith.mulf %18, %16 : vector<8x1xf32>
    %20 = vector.extract_strided_slice %17 {offsets = [0, 1], sizes = [8, 1], strides = [1, 1]} : vector<8x2xf32> to vector<8x1xf32>
    %21 = arith.mulf %7, %19 : vector<8x1xf32>
    %22 = arith.subf %20, %21 : vector<8x1xf32>
    %23 = vector.broadcast %19 : vector<8x1xf32> to vector<8x16xf32>
    %24 = arith.mulf %0, %23 : vector<8x16xf32>
    %25 = vector.broadcast %22 : vector<8x1xf32> to vector<8x16xf32>
    %26 = arith.addf %24, %25 : vector<8x16xf32>
    %c0_8 = arith.constant 0 : index
    %c0_9 = arith.constant 0 : index
    %27 = vector.load %arg3[%c0_8, %c0_9] : memref<8x16xf32, #tpu.memory_space<vmem>>, vector<8x16xf32>
    tpu.vector_store %arg3[%c0_8, %c0_9], %26 {strides = array<i32>} : memref<8x16xf32, #tpu.memory_space<vmem>>, vector<8x16xf32>,
    return
  }
  func.func @transform_0(%arg0: i32) -> (i32, i32) {
    %c0_i32 = arith.constant 0 : i32
    %c0_i32_0 = arith.constant 0 : i32
    return %arg0, %c0_i32 : i32, i32
  }
  func.func @transform_1(%arg0: i32) -> (i32, i32) {
    %c0_i32 = arith.constant 0 : i32
    %c0_i32_0 = arith.constant 0 : i32
    return %arg0, %c0_i32 : i32, i32
  }
  func.func @transform_2(%arg0: i32) -> (i32, i32) {
    %c0_i32 = arith.constant 0 : i32
    %c0_i32_0 = arith.constant 0 : i32
    return %arg0, %c0_i32 : i32, i32
  }
}

</mosaic_0001>

<bundles_post_ra>
// kernel: tpu_custom_call.1
= control target key start
LH: loop header
LB: loop body
LE: loop exit
PB: predicated region body
PF: predicated region fallthrough
CT: control target
= control target key end

     0   :  { %vm13_vm0 = vcmask 130048   ;;  %s135_s0 = inlined_call_operand.vmem [shape: f32[8,16], index: 0, kind: input, shape index: {}]   ;;  %s136_s1 = inlined_call_operand.vmem [shape: f32[8,2], index: 1, kind: input, shape index: {}]   ;;  %s137_s2 = inlined_call_operand.hbm [shape: f32[8,16], index: 2, kind: output, shape index: {}]  }
   0x1   :  { %v12_v0 = vld [vmem:[%s135_s0] sm:$0xff] }
   0x2   :  { %7 = vsyncpa [#allocation3], 0  ;;  %v14_v1 = vsel %vm13_vm0, %v12_v0, 0.0  ;;  %v17_v2 = vmul.f32 %v12_v0, %v12_v0  ;;  %v95_v4 = vmov 0   ;;  %v96_v13 = vmov 1   ;;  %v28_v14 = vld [vmem:[%s136_s1] sm:$0xff] }
   0x3   :  { %15 = vadd.xlane.f32.xlu0 %v14_v1  ;;  %67 = vset.pattern.permute.xlu1 %v95_v4  ;;  %s97_s12 = smov 1   ;;  %s98_s13 = smov [#allocation2]  }
   0x4   :  { %v18_v3 = vsel %vm13_vm0, %v17_v2, 0.0  ;;  %68 = vset.pattern.permute.xlu0 %v96_v13  ;;  %s55_s14 = sshll.u32 %s98_s13, 4  ;;  %s56_s14 = int_to_ptr.vmem [resolvable:$true] %s55_s14 }
   0x5   :  { %s71_s15 = scalar_lea.vmem %s56_s14, 128  ;;  %p76_p1 = scmp.lt.s32.totalorder %s56_s14, %s56_s14 }
   0x6   :  { %p72_p0 = scmp.ne.s32.totalorder %s56_s14, %s71_s15  ;;  %p77_p2 = scmp.lt.s32.totalorder %s71_s15, %s71_s15 }
   0x7   :  { %19 = vadd.xlane.f32.xlu0 %v18_v3 }
   0x8   :  { %p78_p3 = por %p77_p2, %p76_p1 }
   0xa   :  { %p79_p4 = pnand %p78_p3, %p72_p0 }
  0x90   :  { %v16_v5 = vpop.xlane.xlu0 %15 }
  0x91   :  { %v21_v6 = vmul.f32 0.0625, %v16_v5 }
  0x93   :  { %v23_v8 = vmul.f32 %v21_v6, %v21_v6 }
  0x94   :  { %v20_v7 = vpop.xlane.xlu0 %19 }
  0x95   :  { %v22_v9 = vmul.f32 0.0625, %v20_v7 }
  0x97   :  { %v24_v10 = vsub.f32 %v22_v9, %v23_v8 }
  0x99   :  { %v25_v11 = vmax.f32 %v24_v10, 0.0 }
  0x9b   :  { %v26_v12 = vadd.f32 1e-05, %v25_v11 }
  0x9d   :  { %69 = vrsqrt.f32 %v26_v12 }
  0xa7   :  { %v70_v15 = vpop.eup %69 }
  0xa8   :  { %v29_v16 = vmul.f32 %v70_v15, %v28_v14 }
  0xaa   :  { %v30_v17 = vmul.f32 %v29_v16, %v21_v6 }
  0xac   :  { %32 = vrot.lane.b32.xlu1 %v30_v17, %s97_s12 }
  0xb0   :  { %38 = vperm.xlu1 %67, %v29_v16  }
 0x11e   :  { %v33_v18 = vpop.permute.xlu1 %32 }
 0x11f   :  { %v35_v19 = vsub.f32 %v28_v14, %v33_v18 }
 0x121   :  { %44 = vperm.xlu0 %68, %v35_v19  }
 0x12f   :  { %v39_v20 = vpop.permute.xlu1 %38 }
 0x130   :  { %v41_v21 = vmul.f32 %v39_v20, %v12_v0 }
 0x1a0   :  { %v45_v22 = vpop.permute.xlu0 %44 }
 0x1a1   :  { %v47_v23 = vadd.f32 %v45_v22, %v41_v21 }
 0x1a3   :  { %48 = vst.msk [vmem:[#allocation2] sm:$0xff] %vm13_vm0, %v47_v23 }
 0x1a4   :  { %82 = shalt.err (!%p79_p4)
}
 0x1a5   :  { %s83_s17 = scalar_lea.hbm %s137_s2, 128 }
 0x1a6   :  { %p84_p5 = scmp.ne.s32.totalorder %s137_s2, %s83_s17  ;;  %p87_p6 = scmp.lt.u32.totalorder %s83_s17, %s137_s2 }
 0x1a8   :  { %p89_p7 = pnand %p87_p6, %p84_p5 }
 0x1aa   :  { %92 = shalt.err (!%p89_p7)
}
 0x1ab   :  { %58 = dma.vmem_to_hbm [thread:$0]  %s56_s14, 128, %s137_s2, [#allocation3]  }
 0x1ac   :  { %93 = dma.done.wait [#allocation3], 128  }
 0x1ad   :  { %94 = vsyncadd [#allocation3], 4294967168 }
 0x1ae   :  { %62 = vsyncpa [#allocation3], 1 }

</bundles_post_ra>
